<compile_context>
chip_gen: v5e
topology: v5e:2x2
jax: 0.10.0
libtpu: 0.0.40
codegen_flags: <defaults>
</compile_context>

<pallas_src>
import functools

import jax
import jax.numpy as jnp
from jax.experimental import pallas as pl
from jax.experimental.pallas import tpu as pltpu


def _round_up(x, m):
    return (x + m - 1) // m * m


def _vmem_budget_bytes():
    """~75% of physical VMEM: ~48 MiB on v7x, ~96 MiB on v5e/v6e."""
    cap = 64 * 1024 * 1024  # conservative default (v7x)
    try:
        info = pltpu.get_tpu_info()
        cap = int(getattr(info, "vmem_capacity_bytes", cap)) or cap
    except Exception:
        pass
    return cap * 3 // 4


# ---------------------------------------------------------------------------
# Kernel: tiled  acc += x_blk @ Wb_blk  over K; finalize does bias add and the
# small classifier matmul, writing a lane-dense (128-multiple) logits block.
# ---------------------------------------------------------------------------
def _sinet_kernel(x_ref, wb_ref, bb_ref, wc_ref, bc_ref, logits_ref, acc_ref):
    k = pl.program_id(1)

    @pl.when(k == 0)
    def _():
        acc_ref[...] = jnp.zeros_like(acc_ref)

    # Backbone stand-in matmul (bf16 inputs, f32 accumulate on the MXU).
    acc_ref[...] += jnp.dot(
        x_ref[...], wb_ref[...], preferred_element_type=jnp.float32
    )

    @pl.when(k == pl.num_programs(1) - 1)
    def _():
        feat = acc_ref[...] + bb_ref[...]                       # f32 [tm, E]
        # Classifier matmul on bf16 operands (f32 accumulation).
        logits = jnp.dot(feat.astype(jnp.bfloat16), wc_ref[...],
                         preferred_element_type=jnp.float32)    # f32 [tm, n_pad]
        logits_ref[...] = (logits + bc_ref[...]).astype(logits_ref.dtype)


@functools.partial(jax.jit, static_argnames=("tm", "tk"))
def _sinet_pallas_forward(x_bf16, wb_bf16, bb, wc_bf16, bc, *, tm, tk):
    b_pad, d_in_pad = x_bf16.shape
    e = wb_bf16.shape[1]
    n_pad = wc_bf16.shape[1]

    n_batch_blocks = b_pad // tm
    n_k_blocks = d_in_pad // tk
    grid = (n_batch_blocks, n_k_blocks)

    # VMEM footprint: double-buffered streamed x/Wb blocks, single-buffered
    # grid-invariant bb/Wc/bc, double-buffered output block, f32 accumulator.
    vmem_need = (
        2 * (tm * tk * 2 + tk * e * 2)
        + (e * 4 + e * n_pad * 2 + n_pad * 4)
        + 2 * tm * n_pad * 4
        + tm * e * 4
    )
    vmem_limit = min(_vmem_budget_bytes(), max(8 * 1024 * 1024, 2 * vmem_need))

    cost = pl.CostEstimate(
        flops=int(2 * b_pad * d_in_pad * e + 2 * b_pad * e * n_pad),
        transcendentals=0,
        bytes_accessed=int(
            x_bf16.size * 2
            + wb_bf16.size * 2 * n_batch_blocks      # Wb re-read per batch block
            + (bb.size * 4 + wc_bf16.size * 2 + bc.size * 4) * n_batch_blocks
            + b_pad * n_pad * 4
        ),
    )

    # Grid-invariant operands: single-buffered (constant index_map).
    const_mode = pl.Buffered(1)

    logits = pl.pallas_call(
        _sinet_kernel,
        grid=grid,
        in_specs=[
            pl.BlockSpec((tm, tk), lambda b, k: (b, k)),          # x   (streamed)
            pl.BlockSpec((tk, e), lambda b, k: (k, 0)),           # Wb  (streamed)
            pl.BlockSpec((1, e), lambda b, k: (0, 0),
                         pipeline_mode=const_mode),               # bb
            pl.BlockSpec((e, n_pad), lambda b, k: (0, 0),
                         pipeline_mode=const_mode),               # Wc (all heads)
            pl.BlockSpec((1, n_pad), lambda b, k: (0, 0),
                         pipeline_mode=const_mode),               # bc
        ],
        out_specs=pl.BlockSpec((tm, n_pad), lambda b, k: (b, 0)),
        out_shape=jax.ShapeDtypeStruct((b_pad, n_pad), jnp.float32),
        scratch_shapes=[pltpu.VMEM((tm, e), jnp.float32)],
        compiler_params=pltpu.CompilerParams(
            dimension_semantics=("parallel", "arbitrary"),
            vmem_limit_bytes=vmem_limit,
        ),
        cost_estimate=cost,
    )(x_bf16, wb_bf16, bb, wc_bf16, bc)
    return logits


def _linear_init(key, fan_in, fan_out):
    """Deterministic torch.nn.Linear-style init: U(-1/sqrt(fan_in), 1/sqrt(fan_in))."""
    kw, kb = jax.random.split(key)
    bound = 1.0 / (fan_in ** 0.5)
    w = jax.random.uniform(kw, (fan_in, fan_out), jnp.float32, -bound, bound)
    b = jax.random.uniform(kb, (1, fan_out), jnp.float32, -bound, bound)
    return w, b


class SiNetPallas:
    """JAX/Pallas re-implementation of SiNet's forward pass."""

    _TK_MAX = 2048  # reduction tile over d_in (multiple of 128)
    _TM_MAX = 512   # batch-row tile

    def __init__(self, key, *, in_dim, embd_dim, init_cls_num, inc_cls_num, task_num):
        self._cur_task_id = -1
        self.in_dim = in_dim
        self.embd_dim = embd_dim
        self.init_cls_num = init_cls_num
        self.inc_cls_num = inc_cls_num
        self.task_num = task_num

        keys = jax.random.split(key, task_num + 1)

        # TODO(synk): the real backbone is an arbitrary ViT passed into __init__
        # (with expert routing / transformer_module.probs); stand-in here is a
        # deterministic linear feature extractor flatten(x) @ Wb + bb.
        self.wb_f32, self.bb = _linear_init(keys[0], in_dim, embd_dim)

        # Reduction tiling decided once; start from the largest tile and halve
        # while it would force excessive d_in padding (>~12.5%).
        tk = min(self._TK_MAX, _round_up(in_dim, 128))
        while tk > 128 and _round_up(in_dim, tk) - in_dim > max(in_dim // 8, 128):
            tk //= 2
        self._tk = tk
        self._d_in_pad = _round_up(in_dim, tk)

        wb_pad = jnp.pad(self.wb_f32, ((0, self._d_in_pad - in_dim), (0, 0)))
        self.wb_bf16 = wb_pad.astype(jnp.bfloat16)

        # classifier_pool packed once into a 128-lane-padded [E, n_cls_pad]
        # matrix (heads laid out contiguously, matching torch.cat order), bf16.
        total_cls = init_cls_num + (task_num - 1) * inc_cls_num
        self._n_cls_pad = _round_up(total_cls, 128)
        wc_all = jnp.zeros((embd_dim, self._n_cls_pad), jnp.float32)
        bc_all = jnp.zeros((1, self._n_cls_pad), jnp.float32)
        self._head_offsets = []
        col = 0
        for t in range(task_num):
            n_out = init_cls_num if t == 0 else inc_cls_num
            w, b = _linear_init(keys[t + 1], embd_dim, n_out)
            wc_all = wc_all.at[:, col:col + n_out].set(w)
            bc_all = bc_all.at[:, col:col + n_out].set(b)
            self._head_offsets.append(col)
            col += n_out
        self.wc_bf16 = wc_all.astype(jnp.bfloat16)
        self.bc_all = bc_all

    def update_fc(self):
        self._cur_task_id += 1

    def _pick_tm(self, B):
        b8 = _round_up(max(B, 1), 8)
        tm = min(self._TM_MAX, b8)
        # v7x megacore: prefer >= 2 batch blocks once the batch is big enough
        # to split (no effect on the serial grid of v5e/v6e).
        if tm == b8 and b8 >= 256:
            tm = _round_up((b8 + 1) // 2, 8)
        b_pad = _round_up(b8, tm)
        return tm, b_pad

    def forward(self, x, expert_id=0, inference=False):
        # TODO(synk): expert_id / transformer_module.probs routing lives in the
        # external ViT backbone and does not affect the returned logits here.
        del expert_id
        B = x.shape[0]
        x_flat = x.reshape(B, -1)

        tm, b_pad = self._pick_tm(B)
        # Single pad op: batch -> multiple of tm, d_in -> reduction-tile pad.
        xp = jnp.pad(
            x_flat.astype(jnp.bfloat16),
            ((0, b_pad - B), (0, self._d_in_pad - self.in_dim)),
        )

        logits_pad = _sinet_pallas_forward(
            xp, self.wb_bf16, self.bb, self.wc_bf16, self.bc_all,
            tm=tm, tk=self._tk,
        )

        if inference:
            # torch.cat over heads 0..cur_task == the leading columns of the
            # packed classifier matrix.
            n_cols = self.init_cls_num + self._cur_task_id * self.inc_cls_num
            return logits_pad[:B, :n_cols]
        off = self._head_offsets[self._cur_task_id]
        n_out = self.init_cls_num if self._cur_task_id == 0 else self.inc_cls_num
        return logits_pad[:B, off:off + n_out]

    __call__ = forward


if __name__ == "__main__":
    key = jax.random.PRNGKey(0)
    k_x, k_model = jax.random.split(key)

    # Small shapes consistent with the module: NCHW image input, small ViT-ish dims.
    B, C, H, W = 2, 4, 16, 16
    embd_dim = 32
    init_cls_num, inc_cls_num, task_num = 4, 4, 4

    x = jax.random.normal(k_x, (B, C, H, W), jnp.float32)

    model = SiNetPallas(
        k_model,
        in_dim=C * H * W,
        embd_dim=embd_dim,
        init_cls_num=init_cls_num,
        inc_cls_num=inc_cls_num,
        task_num=task_num,
    )

    # Advance through 3 tasks (cur_task_id = 2), like repeated update_fc() calls.
    for _ in range(3):
        model.update_fc()

    # Training path: single current-task classifier head.
    logits_train = model(x, expert_id=0, inference=False)
    logits_train = jax.block_until_ready(logits_train)
    assert logits_train.shape == (B, inc_cls_num), logits_train.shape

    # Inference path: concatenated heads 0..cur_task_id.
    logits_inf = model(x, expert_id=0, inference=True)
    logits_inf = jax.block_until_ready(logits_inf)
    expected_cols = init_cls_num + 2 * inc_cls_num  # tasks 0, 1, 2
    assert logits_inf.shape == (B, expected_cols), logits_inf.shape

    # Cross-check against a plain-JAX reference using the same bf16-cast
    # operands (the kernel accumulates bf16 products in f32 on the MXU).
    x_flat_bf = x.reshape(B, -1).astype(jnp.bfloat16).astype(jnp.float32)
    wb_ref = model.wb_bf16[:model.in_dim].astype(jnp.float32)
    feat_ref = x_flat_bf @ wb_ref + model.bb
    feat_bf = feat_ref.astype(jnp.bfloat16).astype(jnp.float32)
    wc_f32 = model.wc_bf16.astype(jnp.float32)

    ref_inf = (feat_bf @ wc_f32[:, :expected_cols]
               + model.bc_all[:, :expected_cols])
    assert jnp.allclose(logits_inf, ref_inf, atol=2e-3, rtol=2e-3)

    off = model._head_offsets[model._cur_task_id]
    ref_train = (feat_bf @ wc_f32[:, off:off + inc_cls_num]
                 + model.bc_all[:, off:off + inc_cls_num])
    assert jnp.allclose(logits_train, ref_train, atol=2e-3, rtol=2e-3)

    print("KERNEL_OK")
</pallas_src>

<mosaic_0001>
module attributes {stable_mosaic.version = 11 : i64} {
  func.func @_sinet_kernel(%arg0: i32, %arg1: i32, %arg2: memref<8x1024xbf16, #tpu.memory_space<vmem>>, %arg3: memref<1024x32xbf16, #tpu.memory_space<vmem>>, %arg4: memref<1x32xf32, #tpu.memory_space<vmem>>, %arg5: memref<32x128xbf16, #tpu.memory_space<vmem>>, %arg6: memref<1x128xf32, #tpu.memory_space<vmem>>, %arg7: memref<8x128xf32, #tpu.memory_space<vmem>>, %arg8: memref<8x32xf32, #tpu.memory_space<vmem>>) attributes {dimension_semantics = [#tpu.dimension_semantics<parallel>, #tpu.dimension_semantics<arbitrary>], iteration_bounds = array<i64: 1, 1>, scalar_prefetch = 0 : i64, scratch_operands = 1 : i64, tpu.core_type = #tpu.core_type<tc>, window_params = [{transform_indices = @transform_0, window_bounds = array<i64: 8, 1024>}, {transform_indices = @transform_1, window_bounds = array<i64: 1024, 32>}, {pipeline_mode = #tpu.pipeline_mode<synchronous>, transform_indices = @transform_2, window_bounds = array<i64: 1, 32>}, {pipeline_mode = #tpu.pipeline_mode<synchronous>, transform_indices = @transform_3, window_bounds = array<i64: 32, 128>}, {pipeline_mode = #tpu.pipeline_mode<synchronous>, transform_indices = @transform_4, window_bounds = array<i64: 1, 128>}, {transform_indices = @transform_5, window_bounds = array<i64: 8, 128>}]} {
    %c0_i32 = arith.constant 0 : i32
    %0 = arith.cmpi eq, %arg1, %c0_i32 : i32
    %1 = arith.extui %0 : i1 to i32
    %c0_i32_0 = arith.constant 0 : i32
    %2 = arith.cmpi ne, %1, %c0_i32_0 : i32
    scf.if %2 {
      %cst_10 = arith.constant 0.000000e+00 : f32
      %12 = vector.broadcast %cst_10 : f32 to vector<8x32xf32>
      %c0_11 = arith.constant 0 : index
      %c0_12 = arith.constant 0 : index
      %13 = vector.load %arg8[%c0_11, %c0_12] : memref<8x32xf32, #tpu.memory_space<vmem>>, vector<8x32xf32>
      tpu.vector_store %arg8[%c0_11, %c0_12], %12 {strides = array<i32>} : memref<8x32xf32, #tpu.memory_space<vmem>>, vector<8x32xf32>,
    } else {
    }
    %c0 = arith.constant 0 : index
    %c0_1 = arith.constant 0 : index
    %3 = vector.load %arg8[%c0, %c0_1] : memref<8x32xf32, #tpu.memory_space<vmem>>, vector<8x32xf32>
    %c0_2 = arith.constant 0 : index
    %c0_3 = arith.constant 0 : index
    %4 = vector.load %arg2[%c0_2, %c0_3] : memref<8x1024xbf16, #tpu.memory_space<vmem>>, vector<8x1024xbf16>
    %c0_4 = arith.constant 0 : index
    %c0_5 = arith.constant 0 : index
    %5 = vector.load %arg3[%c0_4, %c0_5] : memref<1024x32xbf16, #tpu.memory_space<vmem>>, vector<1024x32xbf16>
    %cst = arith.constant dense<0.000000e+00> : vector<8x32xf32>
    %6 = tpu.matmul %4, %5, %cst {dimension_numbers = #tpu.dot_dimension_numbers<[1], [0], [0], [1], [0, 0, 1, 1], [], []>} : vector<8x1024xbf16>, vector<1024x32xbf16>, vector<8x32xf32> -> vector<8x32xf32>
    %7 = arith.addf %3, %6 : vector<8x32xf32>
    %c0_6 = arith.constant 0 : index
    %c0_7 = arith.constant 0 : index
    %8 = vector.load %arg8[%c0_6, %c0_7] : memref<8x32xf32, #tpu.memory_space<vmem>>, vector<8x32xf32>
    tpu.vector_store %arg8[%c0_6, %c0_7], %7 {strides = array<i32>} : memref<8x32xf32, #tpu.memory_space<vmem>>, vector<8x32xf32>,
    %c0_i32_8 = arith.constant 0 : i32
    %9 = arith.cmpi eq, %arg1, %c0_i32_8 : i32
    %10 = arith.extui %9 : i1 to i32
    %c0_i32_9 = arith.constant 0 : i32
    %11 = arith.cmpi ne, %10, %c0_i32_9 : i32
    scf.if %11 {
      %c0_10 = arith.constant 0 : index
      %c0_11 = arith.constant 0 : index
      %12 = vector.load %arg8[%c0_10, %c0_11] : memref<8x32xf32, #tpu.memory_space<vmem>>, vector<8x32xf32>
      %c0_12 = arith.constant 0 : index
      %c0_13 = arith.constant 0 : index
      %13 = vector.load %arg4[%c0_12, %c0_13] : memref<1x32xf32, #tpu.memory_space<vmem>>, vector<1x32xf32>
      %14 = vector.broadcast %13 : vector<1x32xf32> to vector<8x32xf32>
      %15 = arith.addf %12, %14 : vector<8x32xf32>
      %16 = arith.truncf %15 : vector<8x32xf32> to vector<8x32xbf16>
      %c0_14 = arith.constant 0 : index
      %c0_15 = arith.constant 0 : index
      %17 = vector.load %arg5[%c0_14, %c0_15] : memref<32x128xbf16, #tpu.memory_space<vmem>>, vector<32x128xbf16>
      %cst_16 = arith.constant dense<0.000000e+00> : vector<8x128xf32>
      %18 = tpu.matmul %16, %17, %cst_16 {dimension_numbers = #tpu.dot_dimension_numbers<[1], [0], [0], [1], [0, 0, 1, 1], [], []>} : vector<8x32xbf16>, vector<32x128xbf16>, vector<8x128xf32> -> vector<8x128xf32>
      %c0_17 = arith.constant 0 : index
      %c0_18 = arith.constant 0 : index
      %19 = vector.load %arg6[%c0_17, %c0_18] : memref<1x128xf32, #tpu.memory_space<vmem>>, vector<1x128xf32>
      %20 = vector.broadcast %19 : vector<1x128xf32> to vector<8x128xf32>
      %21 = arith.addf %18, %20 : vector<8x128xf32>
      %c0_19 = arith.constant 0 : index
      %c0_20 = arith.constant 0 : index
      %22 = vector.load %arg7[%c0_19, %c0_20] : memref<8x128xf32, #tpu.memory_space<vmem>>, vector<8x128xf32>
      tpu.vector_store %arg7[%c0_19, %c0_20], %21 {strides = array<i32>} : memref<8x128xf32, #tpu.memory_space<vmem>>, vector<8x128xf32>,
    } else {
    }
    return
  }
  func.func @transform_0(%arg0: i32, %arg1: i32) -> (i32, i32) {
    %c0_i32 = arith.constant 0 : i32
    return %arg0, %arg1 : i32, i32
  }
  func.func @transform_1(%arg0: i32, %arg1: i32) -> (i32, i32) {
    %c0_i32 = arith.constant 0 : i32
    %c0_i32_0 = arith.constant 0 : i32
    return %arg1, %c0_i32 : i32, i32
  }
  func.func @transform_2(%arg0: i32, %arg1: i32) -> (i32, i32) {
    %c0_i32 = arith.constant 0 : i32
    %c0_i32_0 = arith.constant 0 : i32
    %c0_i32_1 = arith.constant 0 : i32
    return %c0_i32, %c0_i32_0 : i32, i32
  }
  func.func @transform_3(%arg0: i32, %arg1: i32) -> (i32, i32) {
    %c0_i32 = arith.constant 0 : i32
    %c0_i32_0 = arith.constant 0 : i32
    %c0_i32_1 = arith.constant 0 : i32
    return %c0_i32, %c0_i32_0 : i32, i32
  }
  func.func @transform_4(%arg0: i32, %arg1: i32) -> (i32, i32) {
    %c0_i32 = arith.constant 0 : i32
    %c0_i32_0 = arith.constant 0 : i32
    %c0_i32_1 = arith.constant 0 : i32
    return %c0_i32, %c0_i32_0 : i32, i32
  }
  func.func @transform_5(%arg0: i32, %arg1: i32) -> (i32, i32) {
    %c0_i32 = arith.constant 0 : i32
    %c0_i32_0 = arith.constant 0 : i32
    return %arg0, %c0_i32 : i32, i32
  }
}

</mosaic_0001>

<bundles_post_ra>
// kernel: _sinet_pallas_forward.1
= control target key start
LH: loop header
LB: loop body
LE: loop exit
PB: predicated region body
PF: predicated region fallthrough
CT: control target
= control target key end

     0   :  { %s1358_s0 = inlined_call_operand.vmem [shape: bf16[8,1024], index: 0, kind: input, shape index: {}]   ;;  %s1359_s1 = inlined_call_operand.vmem [shape: bf16[1024,32], index: 1, kind: input, shape index: {}]   ;;  %s1360_s2 = inlined_call_operand.vmem [shape: f32[1,32], index: 2, kind: input, shape index: {}]   ;;  %s1361_s3 = inlined_call_operand.vmem [shape: bf16[32,128], index: 3, kind: input, shape index: {}]   ;;  %s1362_s4 = inlined_call_operand.vmem [shape: f32[1,128], index: 4, kind: input, shape index: {}]   ;;  %s1363_s5 = inlined_call_operand.hbm [shape: f32[8,128], index: 5, kind: output, shape index: {}]  }
   0x1   :  { %v1015_v0 = vld [vmem:[%s1359_s1 + $0x38] sm:$0xff]  ;;  %v1014_v4 = vld [vmem:[%s1359_s1 + $0x30] sm:$0xff]  ;;  %v1013_v8 = vld [vmem:[%s1359_s1 + $0x28] sm:$0xff] }
   0x2   :  { %v1023_v1 = vld [vmem:[%s1359_s1 + $0x78] sm:$0xff]  ;;  %573 = vmatpush.bf16.msra.mxu0 %v1015_v0  ;;  %v1022_v5 = vld [vmem:[%s1359_s1 + $0x70] sm:$0xff]  ;;  %v1021_v9 = vld [vmem:[%s1359_s1 + $0x68] sm:$0xff] }
   0x3   :  { %v1031_v2 = vld [vmem:[%s1359_s1 + $0xb8] sm:$0xff]  ;;  %586 = vmatpush.bf16.msra.mxu1 %v1023_v1  ;;  %v1030_v6 = vld [vmem:[%s1359_s1 + $0xb0] sm:$0xff]  ;;  %v1029_v10 = vld [vmem:[%s1359_s1 + $0xa8] sm:$0xff] }
   0x4   :  { %v1039_v3 = vld [vmem:[%s1359_s1 + $0xf8] sm:$0xff]  ;;  %599 = vmatpush.bf16.msra.mxu2 %v1031_v2  ;;  %v1038_v7 = vld [vmem:[%s1359_s1 + $0xf0] sm:$0xff]  ;;  %v1037_v11 = vld [vmem:[%s1359_s1 + $0xe8] sm:$0xff] }
   0x5   :  { %612 = vmatpush.bf16.msra.mxu3 %v1039_v3  ;;  %v1012_v12 = vld [vmem:[%s1359_s1 + $0x20] sm:$0xff]  ;;  %v1011_v16 = vld [vmem:[%s1359_s1 + $0x18] sm:$0xff]  ;;  %v1010_v20 = vld [vmem:[%s1359_s1 + $0x10] sm:$0xff] }
   0x6   :  { %574 = vmatpush.bf16.msra.mxu0 %v1014_v4  ;;  %v1020_v13 = vld [vmem:[%s1359_s1 + $0x60] sm:$0xff]  ;;  %v1019_v17 = vld [vmem:[%s1359_s1 + $0x58] sm:$0xff]  ;;  %v1018_v21 = vld [vmem:[%s1359_s1 + $0x50] sm:$0xff] }
   0x7   :  { %587 = vmatpush.bf16.msra.mxu1 %v1022_v5  ;;  %v1028_v14 = vld [vmem:[%s1359_s1 + $0xa0] sm:$0xff]  ;;  %v1027_v18 = vld [vmem:[%s1359_s1 + $0x98] sm:$0xff]  ;;  %v1026_v22 = vld [vmem:[%s1359_s1 + $0x90] sm:$0xff] }
   0x8   :  { %600 = vmatpush.bf16.msra.mxu2 %v1030_v6  ;;  %v1036_v15 = vld [vmem:[%s1359_s1 + $0xe0] sm:$0xff]  ;;  %v1035_v19 = vld [vmem:[%s1359_s1 + $0xd8] sm:$0xff]  ;;  %v1034_v23 = vld [vmem:[%s1359_s1 + $0xd0] sm:$0xff] }
   0x9   :  { %613 = vmatpush.bf16.msra.mxu3 %v1038_v7 }
   0xa   :  { %575 = vmatpush.bf16.msra.mxu0 %v1013_v8 }
   0xb   :  { %588 = vmatpush.bf16.msra.mxu1 %v1021_v9 }
   0xc   :  { %601 = vmatpush.bf16.msra.mxu2 %v1029_v10 }
   0xd   :  { %614 = vmatpush.bf16.msra.mxu3 %v1037_v11 }
   0xe   :  { %576 = vmatpush.bf16.msra.mxu0 %v1012_v12 }
   0xf   :  { %589 = vmatpush.bf16.msra.mxu1 %v1020_v13 }
  0x10   :  { %602 = vmatpush.bf16.msra.mxu2 %v1028_v14 }
  0x11   :  { %615 = vmatpush.bf16.msra.mxu3 %v1036_v15 }
  0x12   :  { %577 = vmatpush.bf16.msra.mxu0 %v1011_v16 }
  0x13   :  { %590 = vmatpush.bf16.msra.mxu1 %v1019_v17 }
  0x14   :  { %603 = vmatpush.bf16.msra.mxu2 %v1027_v18 }
  0x15   :  { %616 = vmatpush.bf16.msra.mxu3 %v1035_v19 }
  0x16   :  { %10 = vsyncpa [#allocation4], 0  ;;  %578 = vmatpush.bf16.msra.mxu0 %v1010_v20  ;;  %v1009_v24 = vld [vmem:[%s1359_s1 + $0x8] sm:$0xff]  ;;  %v29_v29 = vld [vmem:[%s1358_s0] sm:$0xff]  ;;  %vm26_vm0 = vcmask 261120   ;;  %s1105_s9 = smov [#allocation3]  }
  0x17   :  { %591 = vmatpush.bf16.msra.mxu1 %v1018_v21  ;;  %v1017_v25 = vld [vmem:[%s1359_s1 + $0x48] sm:$0xff]  ;;  %v1008_v30 = vld [vmem:[%s1359_s1] sm:$0xff]  ;;  %v165_v33 = vunpack.c.l.b16 %v29_v29  ;;  %v166_v37 = vunpack.c.h.b16 %v29_v29  ;;  %v1047_v38 = vld [vmem:[%s1359_s1 + $0x138] sm:$0xff]  ;;  %s732_s10 = sshll.u32 %s1105_s9, 4  ;;  %s734_s13 = sshll.u32 %s1363_s5, 4  ;;  %s733_s10 = int_to_ptr.vmem [resolvable:$true] %s732_s10  ;;  %s735_s13 = int_to_ptr.hbm [resolvable:$true] %s734_s13 }
  0x18   :  { %v1025_v26 = vld [vmem:[%s1359_s1 + $0x88] sm:$0xff]  ;;  %604 = vmatpush.bf16.msra.mxu2 %v1026_v22  ;;  %v1016_v31 = vld [vmem:[%s1359_s1 + $0x40] sm:$0xff]  ;;  %v1055_v39 = vld [vmem:[%s1359_s1 + $0x178] sm:$0xff]  ;;  %v1104_v22 = vmov 0.0  }
  0x19   :  { %617 = vmatpush.bf16.msra.mxu3 %v1034_v23  ;;  %v1033_v27 = vld [vmem:[%s1359_s1 + $0xc8] sm:$0xff]  ;;  %v1024_v34 = vld [vmem:[%s1359_s1 + $0x80] sm:$0xff]  ;;  %v1063_v40 = vld [vmem:[%s1359_s1 + $0x1b8] sm:$0xff]  ;;  %v173_v43 = vpack.c.b16 %v165_v33, %v165_v33  ;;  %v174_v45 = vpack.c.b16 %v166_v37, %v166_v37  ;;  %27 = vst.msk [vmem:[#allocation2] sm:$0xff] %vm26_vm0, %v1104_v22 }
  0x1a   :  { %v30_v28 = vld [vmem:[%s1358_s0 + $0x8] sm:$0xff]  ;;  %579 = vmatpush.bf16.msra.mxu0 %v1009_v24  ;;  %v1032_v35 = vld [vmem:[%s1359_s1 + $0xc0] sm:$0xff]  ;;  %v1071_v41 = vld [vmem:[%s1359_s1 + $0x1f8] sm:$0xff] }
  0x1b   :  { %592 = vmatpush.bf16.msra.mxu1 %v1017_v25  ;;  %v167_v32 = vunpack.c.l.b16 %v30_v28  ;;  %v168_v36 = vunpack.c.h.b16 %v30_v28  ;;  %v1046_v46 = vld [vmem:[%s1359_s1 + $0x130] sm:$0xff]  ;;  %v1045_v50 = vld [vmem:[%s1359_s1 + $0x128] sm:$0xff]  ;;  %v1044_v54 = vld [vmem:[%s1359_s1 + $0x120] sm:$0xff] }
  0x1c   :  { %605 = vmatpush.bf16.msra.mxu2 %v1025_v26  ;;  %v1054_v47 = vld [vmem:[%s1359_s1 + $0x170] sm:$0xff]  ;;  %v1053_v51 = vld [vmem:[%s1359_s1 + $0x168] sm:$0xff]  ;;  %v1052_v55 = vld [vmem:[%s1359_s1 + $0x160] sm:$0xff] }
  0x1d   :  { %618 = vmatpush.bf16.msra.mxu3 %v1033_v27  ;;  %v175_v42 = vpack.c.b16 %v167_v32, %v167_v32  ;;  %v176_v44 = vpack.c.b16 %v168_v36, %v168_v36  ;;  %v1062_v48 = vld [vmem:[%s1359_s1 + $0x1b0] sm:$0xff]  ;;  %v1061_v52 = vld [vmem:[%s1359_s1 + $0x1a8] sm:$0xff]  ;;  %v1060_v56 = vld [vmem:[%s1359_s1 + $0x1a0] sm:$0xff] }
  0x1e   :  { %580 = vmatpush.bf16.msra.mxu0 %v1008_v30  ;;  %v1070_v49 = vld [vmem:[%s1359_s1 + $0x1f0] sm:$0xff]  ;;  %v1069_v53 = vld [vmem:[%s1359_s1 + $0x1e8] sm:$0xff]  ;;  %v1068_v57 = vld [vmem:[%s1359_s1 + $0x1e0] sm:$0xff] }
  0x1f   :  { %593 = vmatpush.bf16.msra.mxu1 %v1016_v31  ;;  %v1043_v58 = vld [vmem:[%s1359_s1 + $0x118] sm:$0xff]  ;;  %v1042_v62 = vld [vmem:[%s1359_s1 + $0x110] sm:$0xff]  ;;  %v1041_v2 = vld [vmem:[%s1359_s1 + $0x108] sm:$0xff] }
  0x20   :  { %606 = vmatpush.bf16.msra.mxu2 %v1024_v34  ;;  %v1051_v59 = vld [vmem:[%s1359_s1 + $0x158] sm:$0xff]  ;;  %v1050_v63 = vld [vmem:[%s1359_s1 + $0x150] sm:$0xff]  ;;  %v1049_v3 = vld [vmem:[%s1359_s1 + $0x148] sm:$0xff] }
  0x21   :  { %619 = vmatpush.bf16.msra.mxu3 %v1032_v35  ;;  %581 = vmatmul.bf16.vlgmr.msra.gmra.mxu0 %v173_v43  ;;  %v1059_v60 = vld [vmem:[%s1359_s1 + $0x198] sm:$0xff]  ;;  %v1058_v0 = vld [vmem:[%s1359_s1 + $0x190] sm:$0xff]  ;;  %v1057_v5 = vld [vmem:[%s1359_s1 + $0x188] sm:$0xff] }
  0x22   :  { %625 = vmatpush.bf16.msrb.mxu0 %v1047_v38  ;;  %594 = vmatmul.bf16.vlgmr.msra.gmra.mxu1 %v174_v45  ;;  %v1067_v61 = vld [vmem:[%s1359_s1 + $0x1d8] sm:$0xff]  ;;  %v1066_v1 = vld [vmem:[%s1359_s1 + $0x1d0] sm:$0xff]  ;;  %v1065_v6 = vld [vmem:[%s1359_s1 + $0x1c8] sm:$0xff] }
  0x23   :  { %638 = vmatpush.bf16.msrb.mxu1 %v1055_v39  ;;  %607 = vmatmul.bf16.vlgmr.msra.gmra.mxu2 %v175_v42  ;;  %v31_v4 = vld [vmem:[%s1358_s0 + $0x10] sm:$0xff]  ;;  %v32_v7 = vld [vmem:[%s1358_s0 + $0x18] sm:$0xff]  ;;  %v1040_v10 = vld [vmem:[%s1359_s1 + $0x100] sm:$0xff] }
  0x24   :  { %651 = vmatpush.bf16.msrb.mxu2 %v1063_v40  ;;  %620 = vmatmul.bf16.vlgmr.msra.gmra.mxu3 %v176_v44  ;;  %v169_v8 = vunpack.c.l.b16 %v31_v4  ;;  %v170_v9 = vunpack.c.h.b16 %v31_v4  ;;  %v1048_v11 = vld [vmem:[%s1359_s1 + $0x140] sm:$0xff]  ;;  %v171_v12 = vunpack.c.l.b16 %v32_v7  ;;  %v172_v13 = vunpack.c.h.b16 %v32_v7  ;;  %v1073_v27 = vld [vmem:[%s1361_s3 + $0x8] sm:$0xff] }
  0x25   :  { %664 = vmatpush.bf16.msrb.mxu3 %v1071_v41  ;;  %v1056_v14 = vld [vmem:[%s1359_s1 + $0x180] sm:$0xff] }
  0x26   :  { %626 = vmatpush.bf16.msrb.mxu0 %v1046_v46  ;;  %v1064_v15 = vld [vmem:[%s1359_s1 + $0x1c0] sm:$0xff]  ;;  %v177_v16 = vpack.c.b16 %v169_v8, %v169_v8  ;;  %v178_v17 = vpack.c.b16 %v170_v9, %v170_v9  ;;  %v179_v18 = vpack.c.b16 %v171_v12, %v171_v12  ;;  %v180_v19 = vpack.c.b16 %v172_v13, %v172_v13 }
  0x27   :  { %639 = vmatpush.bf16.msrb.mxu1 %v1054_v47  ;;  %v1072_v28 = vld [vmem:[%s1361_s3] sm:$0xff] }
  0x28   :  { %652 = vmatpush.bf16.msrb.mxu2 %v1062_v48  ;;  %v28_v43 = vld [vmem:[#allocation2] sm:$0xff] }
  0x29   :  { %665 = vmatpush.bf16.msrb.mxu3 %v1070_v49  ;;  %v1076_v48 = vld [vmem:[%s1360_s2] ss:$0 sm:$0xff] }
  0x2a   :  { %627 = vmatpush.bf16.msrb.mxu0 %v1045_v50 }
  0x2b   :  { %640 = vmatpush.bf16.msrb.mxu1 %v1053_v51 }
  0x2c   :  { %653 = vmatpush.bf16.msrb.mxu2 %v1061_v52  ;;  %v1077_v52 = vld [vmem:[%s1362_s4] ss:$0 sm:$0xff] }
  0x2d   :  { %666 = vmatpush.bf16.msrb.mxu3 %v1069_v53 }
  0x2e   :  { %628 = vmatpush.bf16.msrb.mxu0 %v1044_v54 }
  0x2f   :  { %641 = vmatpush.bf16.msrb.mxu1 %v1052_v55 }
  0x30   :  { %654 = vmatpush.bf16.msrb.mxu2 %v1060_v56 }
  0x31   :  { %667 = vmatpush.bf16.msrb.mxu3 %v1068_v57 }
  0x32   :  { %629 = vmatpush.bf16.msrb.mxu0 %v1043_v58 }
  0x33   :  { %642 = vmatpush.bf16.msrb.mxu1 %v1051_v59 }
  0x34   :  { %655 = vmatpush.bf16.msrb.mxu2 %v1059_v60 }
  0x35   :  { %668 = vmatpush.bf16.msrb.mxu3 %v1067_v61 }
  0x36   :  { %630 = vmatpush.bf16.msrb.mxu0 %v1042_v62 }
  0x37   :  { %643 = vmatpush.bf16.msrb.mxu1 %v1050_v63 }
  0x38   :  { %656 = vmatpush.bf16.msrb.mxu2 %v1058_v0 }
  0x39   :  { %669 = vmatpush.bf16.msrb.mxu3 %v1066_v1 }
  0x3a   :  { %631 = vmatpush.bf16.msrb.mxu0 %v1041_v2 }
  0x3b   :  { %644 = vmatpush.bf16.msrb.mxu1 %v1049_v3 }
  0x3c   :  { %657 = vmatpush.bf16.msrb.mxu2 %v1057_v5 }
  0x3d   :  { %670 = vmatpush.bf16.msrb.mxu3 %v1065_v6 }
  0x3e   :  { %632 = vmatpush.bf16.msrb.mxu0 %v1040_v10 }
  0x3f   :  { %645 = vmatpush.bf16.msrb.mxu1 %v1048_v11 }
  0x40   :  { %658 = vmatpush.bf16.msrb.mxu2 %v1056_v14 }
  0x41   :  { %671 = vmatpush.bf16.msrb.mxu3 %v1064_v15  ;;  %633 = vmatmul.bf16.vlgmr.msrb.gmra.mxu0 %v177_v16 }
  0x42   :  { %646 = vmatmul.bf16.vlgmr.msrb.gmra.mxu1 %v178_v17  ;;  %719 = vmatpush.bf16.msra.mxu0 %v1073_v27 }
  0x43   :  { %659 = vmatmul.bf16.vlgmr.msrb.gmra.mxu2 %v179_v18 }
  0x44   :  { %672 = vmatmul.bf16.vlgmr.msrb.gmra.mxu3 %v180_v19 }
  0x46   :  { %720 = vmatpush.bf16.msra.mxu0 %v1072_v28 }
  0x9e   :  { %v582_v20 = vpop.f32.mrf.mxu0 }
  0x9f   :  { %v595_v21 = vpop.f32.mrf.mxu1 }
  0xa0   :  { %v596_v31 = vadd.f32 %v595_v21, %v582_v20 }
  0xa6   :  { %v608_v23 = vpop.f32.mrf.mxu2  ;;  %v584_v25 = vpop.f32.mrf.mxu0 }
  0xa7   :  { %v621_v24 = vpop.f32.mrf.mxu3  ;;  %v597_v26 = vpop.f32.mrf.mxu1  ;;  %v609_v32 = vadd.f32 %v608_v23, %v596_v31 }
  0xa9   :  { %v622_v33 = vadd.f32 %v621_v24, %v609_v32 }
  0xae   :  { %v610_v29 = vpop.f32.mrf.mxu2 }
  0xaf   :  { %v623_v30 = vpop.f32.mrf.mxu3 }
  0xbe   :  { %v634_v34 = vpop.f32.mrf.mxu0 }
  0xbf   :  { %v647_v35 = vpop.f32.mrf.mxu1  ;;  %v635_v36 = vadd.f32 %v634_v34, %v622_v33 }
  0xc1   :  { %v648_v37 = vadd.f32 %v647_v35, %v635_v36 }
  0xc6   :  { %v660_v38 = vpop.f32.mrf.mxu2  ;;  %v636_v41 = vpop.f32.mrf.mxu0 }
  0xc7   :  { %v673_v39 = vpop.f32.mrf.mxu3  ;;  %v661_v40 = vadd.f32 %v660_v38, %v648_v37  ;;  %v649_v42 = vpop.f32.mrf.mxu1 }
  0xc9   :  { %v674_v44 = vadd.f32 %v673_v39, %v661_v40 }
  0xcb   :  { %v677_v45 = vadd.f32 %v674_v44, %v28_v43 }
  0xcd   :  { %679 = vst.msk [vmem:[#allocation2] sm:$0xff] %vm26_vm0, %v677_v45 }
  0xce   :  { %v662_v46 = vpop.f32.mrf.mxu2 }
  0xcf   :  { %v675_v47 = vpop.f32.mrf.mxu3 }
  0xd4   :  { %v683_v49 = vld [vmem:[#allocation2] sm:$0xff] }
  0xd5   :  { %v688_v50 = vadd.f32 %v1076_v48, %v683_v49 }
  0xd7   :  { %v689_v51 = vpack.c.bf16 %v688_v50, %v688_v50 }
  0xd9   :  { %1007 = vmatmul.msk.bf16.vlgmr.msra.gmra.mxu0 %vm26_vm0, %v689_v51 }
 0x156   :  { %v722_v53 = vpop.f32.mrf.mxu0 }
 0x157   :  { %v723_v54 = vadd.f32 %v1077_v52, %v722_v53 }
 0x159   :  { %726 = vst [vmem:[#allocation3] sm:$0xff] %v723_v54 }
 0x15a   :  { %737 = dma.vmem_to_hbm [thread:$0]  %s733_s10, 128, %s735_s13, [#allocation4]  }
 0x15e   :  { %v724_v55 = vpop.f32.mrf.mxu0 }
 0x15f   :  { %1102 = dma.done.wait [#allocation4], 128  }
 0x160   :  { %1103 = vsyncadd [#allocation4], 4294967168 }
 0x161   :  { %742 = vsyncpa [#allocation4], 1 }

</bundles_post_ra>
